<compile_context>
chip_gen: v5e
topology: v5e:2x2
jax: 0.10.0
libtpu: 0.0.40
codegen_flags: <defaults>
</compile_context>

<pallas_src>
import functools

import jax
import jax.numpy as jnp
from jax.experimental import pallas as pl
from jax.experimental.pallas import tpu as pltpu

_LANE = 128          # vreg lane width
_MAX_TILE = 32768    # max lanes per grid step (~0.5 MiB of operands per step)


def _round_up(x, m):
    return ((x + m - 1) // m) * m


def _tg_regression_kernel(loc_ref, s_ref, e_ref, out_ref, *, inv_b):
    # loc_ref : [2, T] f32  (row 0 = predicted starts, row 1 = predicted ends)
    # s_ref   : [1, T] f32  ground-truth starts
    # e_ref   : [1, T] f32  ground-truth ends
    # out_ref : [1, 1] f32  SMEM scalar, resident across the grid (accumulator)
    i = pl.program_id(0)

    @pl.when(i == 0)
    def _():
        out_ref[0, 0] = jnp.float32(0.0)

    def smooth_l1_sum(d):
        ad = jnp.abs(d)
        return jnp.sum(jnp.where(ad < 1.0, 0.5 * d * d, ad - 0.5))

    d0 = loc_ref[0:1, :] - s_ref[...]
    d1 = loc_ref[1:2, :] - e_ref[...]
    out_ref[0, 0] += smooth_l1_sum(d0) + smooth_l1_sum(d1)

    @pl.when(i == pl.num_programs(0) - 1)
    def _():
        # multiply by compile-time reciprocal instead of a dependent divide
        out_ref[0, 0] = out_ref[0, 0] * jnp.float32(inv_b)


def tg_regression_loss(loc, s_gt, e_gt, *, max_tile=_MAX_TILE):
    """Pallas implementation of TGRegressionCriterion.forward.

    loc  : [B, 2] predicted (start, end) positions
    s_gt : [B]    ground-truth start positions
    e_gt : [B]    ground-truth end positions
    returns scalar f32 loss.
    """
    B = loc.shape[0]

    # Lane-dense layout: long (batch) axis last.
    loc_t = loc.astype(jnp.float32).T            # [2, B]
    s = s_gt.astype(jnp.float32).reshape(1, B)   # [1, B]
    e = e_gt.astype(jnp.float32).reshape(1, B)   # [1, B]

    tile = min(_round_up(B, _LANE), max_tile)
    n_pad = _round_up(B, tile)
    if n_pad != B:
        pad = n_pad - B
        # Zero-pad predictions and ground truths identically: diff = 0 -> smoothL1 = 0,
        # so padding contributes nothing to the accumulated sum.
        loc_t = jnp.pad(loc_t, ((0, 0), (0, pad)))
        s = jnp.pad(s, ((0, 0), (0, pad)))
        e = jnp.pad(e, ((0, 0), (0, pad)))
    grid = n_pad // tile

    cost = pl.CostEstimate(
        flops=16 * B,                 # sub/abs/mul/mul/sub/cmp/select/add per element, 2B elems
        transcendentals=0,
        bytes_accessed=16 * B + 4,    # loc (8B bytes) + s/e (8B bytes) + scalar out
    )

    out = pl.pallas_call(
        functools.partial(_tg_regression_kernel, inv_b=1.0 / B),
        out_shape=jax.ShapeDtypeStruct((1, 1), jnp.float32),
        grid=(grid,),
        in_specs=[
            pl.BlockSpec((2, tile), lambda i: (0, i)),
            pl.BlockSpec((1, tile), lambda i: (0, i)),
            pl.BlockSpec((1, tile), lambda i: (0, i)),
        ],
        out_specs=pl.BlockSpec(
            (1, 1), lambda i: (0, 0), memory_space=pltpu.MemorySpace.SMEM
        ),
        compiler_params=pltpu.CompilerParams(
            dimension_semantics=("arbitrary",),
        ),
        cost_estimate=cost,
    )(loc_t, s, e)
    return out[0, 0]


def _reference_loss(loc, s_gt, e_gt):
    def smooth_l1(pred, tgt):
        d = pred.astype(jnp.float32) - tgt.astype(jnp.float32)
        ad = jnp.abs(d)
        return jnp.mean(jnp.where(ad < 1.0, 0.5 * d * d, ad - 0.5))

    return smooth_l1(loc[:, 0], s_gt) + smooth_l1(loc[:, 1], e_gt)


if __name__ == "__main__":
    key = jax.random.PRNGKey(0)
    k_loc, k_s, k_e = jax.random.split(key, 3)

    # --- small shape matching the module's forward (B=8, loc is [B, 2]) ---
    B = 8
    loc = jax.random.normal(k_loc, (B, 2), dtype=jnp.float32) * 1.5
    s_gt = jax.random.uniform(k_s, (B,), dtype=jnp.float32)
    e_gt = jax.random.uniform(k_e, (B,), dtype=jnp.float32) + 0.5

    loss = jax.block_until_ready(tg_regression_loss(loc, s_gt, e_gt))
    ref = _reference_loss(loc, s_gt, e_gt)
    assert jnp.allclose(loss, ref, rtol=1e-5, atol=1e-5), (loss, ref)

    # --- exercise padding + multi-step grid accumulation (tile forced small) ---
    B2 = 300
    k2_loc, k2_s, k2_e = jax.random.split(jax.random.PRNGKey(1), 3)
    loc2 = jax.random.normal(k2_loc, (B2, 2), dtype=jnp.float32) * 1.5
    s2 = jax.random.uniform(k2_s, (B2,), dtype=jnp.float32)
    e2 = jax.random.uniform(k2_e, (B2,), dtype=jnp.float32) + 0.5

    loss2 = jax.block_until_ready(tg_regression_loss(loc2, s2, e2, max_tile=128))
    ref2 = _reference_loss(loc2, s2, e2)
    assert jnp.allclose(loss2, ref2, rtol=1e-5, atol=1e-5), (loss2, ref2)

    print("KERNEL_OK")
</pallas_src>

<mosaic_0001>
module attributes {stable_mosaic.version = 11 : i64} {
  func.func @_tg_regression_kernel(%arg0: i32, %arg1: memref<2x128xf32, #tpu.memory_space<vmem>>, %arg2: memref<1x128xf32, #tpu.memory_space<vmem>>, %arg3: memref<1x128xf32, #tpu.memory_space<vmem>>, %arg4: memref<1x1xf32, #tpu.memory_space<smem>>) attributes {dimension_semantics = [#tpu.dimension_semantics<arbitrary>], iteration_bounds = array<i64: 1>, scalar_prefetch = 0 : i64, scratch_operands = 0 : i64, tpu.core_type = #tpu.core_type<tc>, window_params = [{transform_indices = @transform_0, window_bounds = array<i64: 2, 128>}, {transform_indices = @transform_1, window_bounds = array<i64: 1, 128>}, {transform_indices = @transform_2, window_bounds = array<i64: 1, 128>}, {transform_indices = @transform_3, window_bounds = array<i64: 1, 1>}]} {
    %c0_i32 = arith.constant 0 : i32
    %0 = arith.cmpi eq, %arg0, %c0_i32 : i32
    %1 = arith.extui %0 : i1 to i32
    %c0_i32_0 = arith.constant 0 : i32
    %2 = arith.cmpi ne, %1, %c0_i32_0 : i32
    scf.if %2 {
      %cst_20 = arith.constant 0.000000e+00 : f32
      %c0_21 = arith.constant 0 : index
      %c0_22 = arith.constant 0 : index
      %42 = memref.load %arg4[%c0_21, %c0_22] : memref<1x1xf32, #tpu.memory_space<smem>>
      memref.store %cst_20, %arg4[%c0_21, %c0_22] : memref<1x1xf32, #tpu.memory_space<smem>>
    } else {
    }
    %c0 = arith.constant 0 : index
    %c0_1 = arith.constant 0 : index
    %3 = vector.load %arg1[%c0, %c0_1] : memref<2x128xf32, #tpu.memory_space<vmem>>, vector<1x128xf32>
    %c0_2 = arith.constant 0 : index
    %c0_3 = arith.constant 0 : index
    %4 = vector.load %arg2[%c0_2, %c0_3] : memref<1x128xf32, #tpu.memory_space<vmem>>, vector<1x128xf32>
    %5 = arith.subf %3, %4 : vector<1x128xf32>
    %c1 = arith.constant 1 : index
    %c0_4 = arith.constant 0 : index
    %6 = vector.load %arg1[%c1, %c0_4] : memref<2x128xf32, #tpu.memory_space<vmem>>, vector<1x128xf32>
    %c0_5 = arith.constant 0 : index
    %c0_6 = arith.constant 0 : index
    %7 = vector.load %arg3[%c0_5, %c0_6] : memref<1x128xf32, #tpu.memory_space<vmem>>, vector<1x128xf32>
    %8 = arith.subf %6, %7 : vector<1x128xf32>
    %c0_7 = arith.constant 0 : index
    %c0_8 = arith.constant 0 : index
    %9 = memref.load %arg4[%c0_7, %c0_8] : memref<1x1xf32, #tpu.memory_space<smem>>
    %10 = math.absf %5 : vector<1x128xf32>
    %cst = arith.constant 1.000000e+00 : f32
    %11 = vector.broadcast %cst : f32 to vector<1x128xf32>
    %12 = arith.cmpf olt, %10, %11 : vector<1x128xf32>
    %cst_9 = arith.constant 5.000000e-01 : f32
    %13 = vector.broadcast %cst_9 : f32 to vector<1x128xf32>
    %14 = arith.mulf %13, %5 : vector<1x128xf32>
    %15 = arith.mulf %14, %5 : vector<1x128xf32>
    %cst_10 = arith.constant 5.000000e-01 : f32
    %16 = vector.broadcast %cst_10 : f32 to vector<1x128xf32>
    %17 = arith.subf %10, %16 : vector<1x128xf32>
    %18 = arith.select %12, %15, %17 : vector<1x128xi1>, vector<1x128xf32>
    %19 = vector.shape_cast %18 : vector<1x128xf32> to vector<1x1x128xf32>
    %cst_11 = arith.constant dense<0.000000e+00> : vector<1xf32>
    %20 = vector.multi_reduction <add>, %19, %cst_11 [1, 2] : vector<1x1x128xf32> to vector<1xf32>
    %21 = vector.shape_cast %20 : vector<1xf32> to vector<1x1x1xf32>
    %22 = vector.extract %21[0, 0, 0] : f32 from vector<1x1x1xf32>
    %23 = math.absf %8 : vector<1x128xf32>
    %cst_12 = arith.constant 1.000000e+00 : f32
    %24 = vector.broadcast %cst_12 : f32 to vector<1x128xf32>
    %25 = arith.cmpf olt, %23, %24 : vector<1x128xf32>
    %cst_13 = arith.constant 5.000000e-01 : f32
    %26 = vector.broadcast %cst_13 : f32 to vector<1x128xf32>
    %27 = arith.mulf %26, %8 : vector<1x128xf32>
    %28 = arith.mulf %27, %8 : vector<1x128xf32>
    %cst_14 = arith.constant 5.000000e-01 : f32
    %29 = vector.broadcast %cst_14 : f32 to vector<1x128xf32>
    %30 = arith.subf %23, %29 : vector<1x128xf32>
    %31 = arith.select %25, %28, %30 : vector<1x128xi1>, vector<1x128xf32>
    %32 = vector.shape_cast %31 : vector<1x128xf32> to vector<1x1x128xf32>
    %cst_15 = arith.constant dense<0.000000e+00> : vector<1xf32>
    %33 = vector.multi_reduction <add>, %32, %cst_15 [1, 2] : vector<1x1x128xf32> to vector<1xf32>
    %34 = vector.shape_cast %33 : vector<1xf32> to vector<1x1x1xf32>
    %35 = vector.extract %34[0, 0, 0] : f32 from vector<1x1x1xf32>
    %36 = arith.addf %22, %35 : f32
    %37 = arith.addf %9, %36 : f32
    %c0_16 = arith.constant 0 : index
    %c0_17 = arith.constant 0 : index
    %38 = memref.load %arg4[%c0_16, %c0_17] : memref<1x1xf32, #tpu.memory_space<smem>>
    memref.store %37, %arg4[%c0_16, %c0_17] : memref<1x1xf32, #tpu.memory_space<smem>>
    %c0_i32_18 = arith.constant 0 : i32
    %39 = arith.cmpi eq, %arg0, %c0_i32_18 : i32
    %40 = arith.extui %39 : i1 to i32
    %c0_i32_19 = arith.constant 0 : i32
    %41 = arith.cmpi ne, %40, %c0_i32_19 : i32
    scf.if %41 {
      %c0_20 = arith.constant 0 : index
      %c0_21 = arith.constant 0 : index
      %42 = memref.load %arg4[%c0_20, %c0_21] : memref<1x1xf32, #tpu.memory_space<smem>>
      %cst_22 = arith.constant 1.250000e-01 : f32
      %43 = arith.mulf %42, %cst_22 : f32
      %c0_23 = arith.constant 0 : index
      %c0_24 = arith.constant 0 : index
      %44 = memref.load %arg4[%c0_23, %c0_24] : memref<1x1xf32, #tpu.memory_space<smem>>
      memref.store %43, %arg4[%c0_23, %c0_24] : memref<1x1xf32, #tpu.memory_space<smem>>
    } else {
    }
    return
  }
  func.func @transform_0(%arg0: i32) -> (i32, i32) {
    %c0_i32 = arith.constant 0 : i32
    %c0_i32_0 = arith.constant 0 : i32
    return %c0_i32, %arg0 : i32, i32
  }
  func.func @transform_1(%arg0: i32) -> (i32, i32) {
    %c0_i32 = arith.constant 0 : i32
    %c0_i32_0 = arith.constant 0 : i32
    return %c0_i32, %arg0 : i32, i32
  }
  func.func @transform_2(%arg0: i32) -> (i32, i32) {
    %c0_i32 = arith.constant 0 : i32
    %c0_i32_0 = arith.constant 0 : i32
    return %c0_i32, %arg0 : i32, i32
  }
  func.func @transform_3(%arg0: i32) -> (i32, i32) {
    %c0_i32 = arith.constant 0 : i32
    %c0_i32_0 = arith.constant 0 : i32
    %c0_i32_1 = arith.constant 0 : i32
    return %c0_i32, %c0_i32_0 : i32, i32
  }
}

</mosaic_0001>

<bundles_post_ra>
// kernel: tpu_custom_call.1
= control target key start
LH: loop header
LB: loop body
LE: loop exit
PB: predicated region body
PF: predicated region fallthrough
CT: control target
= control target key end

     0   :  { %8 = vsyncpa [#allocation3], 0  ;;  %s227_s0 = inlined_call_operand.hbm [shape: f32[2,128], index: 0, kind: input, shape index: {}]   ;;  %s228_s1 = inlined_call_operand.hbm [shape: f32[1,128], index: 1, kind: input, shape index: {}]   ;;  %s229_s2 = inlined_call_operand.vmem [shape: f32[1,128], index: 2, kind: input, shape index: {}]   ;;  %s230_s3 = inlined_call_operand.hbm [shape: f32[1,1], index: 3, kind: output, shape index: {}]  }
   0x1   :  { %9 = vsyncpa [#allocation6], 0 }
   0x2   :  { %10 = vsyncpa [#allocation4], 0  ;;  %s16_s14 = sshll.u32 %s227_s0, 4  ;;  %s192_s15 = smov [#allocation2]   ;;  %s17_s14 = int_to_ptr.hbm [resolvable:$true] %s16_s14 }
   0x3   :  { %s18_s16 = sshll.u32 %s192_s15, 4  ;;  %s27_s19 = sshll.u32 %s228_s1, 4  ;;  %s19_s16 = int_to_ptr.vmem [resolvable:$true] %s18_s16  ;;  %s28_s19 = int_to_ptr.hbm [resolvable:$true] %s27_s19 }
   0x4   :  { %21 = dma.hbm_to_vmem [thread:$0]  %s17_s14, 32, %s19_s16, [#allocation3]  }
   0x5   :  { %s193_s20 = smov [#allocation5]  }
   0x6   :  { %s29_s21 = sshll.u32 %s193_s20, 4  ;;  %s30_s21 = int_to_ptr.vmem [resolvable:$true] %s29_s21 }
   0x7   :  { %32 = dma.hbm_to_vmem [thread:$0]  %s28_s19, 16, %s30_s21, [#allocation6]  }
   0x8   :  { %186 = dma.done.wait [#allocation3], 32  }
   0x9   :  { %187 = vsyncadd [#allocation3], 4294967264 }
   0xa   :  { %188 = dma.done.wait [#allocation6], 16  }
   0xb   :  { %189 = vsyncadd [#allocation6], 4294967280  ;;  %v49_v0 = vld [vmem:[#allocation2] sm:$0x1]  ;;  %v50_v1 = vld [vmem:[#allocation5] sm:$0x1] }
   0xc   :  { %v52_v2 = vld [vmem:[#allocation2 + $0x1] sm:$0x1]  ;;  %v51_v3 = vsub.f32 %v49_v0, %v50_v1  ;;  %v53_v4 = vld [vmem:[%s229_s2] sm:$0x1]  ;;  %vm62_vm1 = vcmask 1040384   ;;  %s104_s26 = sshll.u32 %s230_s3, 4  ;;  %s105_s26 = int_to_ptr.hbm [resolvable:$true] %s104_s26 }
   0xd   :  { %v54_v5 = vsub.f32 %v52_v2, %v53_v4  ;;  %s194_s28 = smov [#allocation7]  }
   0xe   :  { %v56_v6 = vand.u32 2147483647, %v51_v3  ;;  %v58_v7 = vmul.f32 0.5, %v51_v3 }
   0xf   :  { %v73_v8 = vand.u32 2147483647, %v54_v5  ;;  %v75_v9 = vmul.f32 0.5, %v54_v5 }
  0x10   :  { %vm57_vm0 = vcmp.lt.f32.partialorder %v56_v6, 1.0  ;;  %v59_v10 = vmul.f32 %v58_v7, %v51_v3  ;;  %v116_v11 = vadd.f32 -0.5, %v56_v6 }
  0x11   :  { %v76_v13 = vmul.f32 %v75_v9, %v54_v5  ;;  %v117_v14 = vadd.f32 -0.5, %v73_v8  ;;  %vm74_vm2 = vcmp.lt.f32.partialorder %v73_v8, 1.0 }
  0x12   :  { %v61_v12 = vsel %vm57_vm0, %v59_v10, %v116_v11 }
  0x13   :  { %v63_v15 = vsel %vm62_vm1, %v61_v12, 0.0  ;;  %v78_v16 = vsel %vm74_vm2, %v76_v13, %v117_v14 }
  0x14   :  { %64 = vadd.xlane.f32.xlu0 %v63_v15  ;;  %v79_v17 = vsel %vm62_vm1, %v78_v16, 0.0 }
  0x1c   :  { %80 = vadd.xlane.f32.xlu0 %v79_v17 }
  0x87   :  { %v65_v18 = vpop.xlane.xlu0 %64 }
  0x88   :  { %v66_v19 = vrot.slane %v65_v18, 4 }
  0x8a   :  { %v67_v20 = vadd.f32 %v66_v19, %v65_v18 }
  0x8c   :  { %v68_v21 = vrot.slane %v67_v20, 2 }
  0x8e   :  { %v69_v22 = vadd.f32 %v68_v21, %v67_v20 }
  0x8f   :  { %v81_v23 = vpop.xlane.xlu0 %80 }
  0x90   :  { %v82_v24 = vrot.slane %v81_v23, 4  ;;  %v70_v25 = vrot.slane %v69_v22, 1 }
  0x92   :  { %v83_v26 = vadd.f32 %v82_v24, %v81_v23  ;;  %v71_v27 = vadd.f32 %v70_v25, %v69_v22 }
  0x94   :  { %v84_v28 = vrot.slane %v83_v26, 2  ;;  %118 = vpush %v71_v27 }
  0x96   :  { %v85_v29 = vadd.f32 %v84_v28, %v83_v26 }
  0x98   :  { %v86_v30 = vrot.slane %v85_v29, 1 }
  0x9a   :  { %v87_v31 = vadd.f32 %v86_v30, %v85_v29 }
  0x9c   :  { %120 = vpush %v87_v31 }
  0xc5   :  { %s119_s1 = spop %118 }
  0xcd   :  { %s121_s2 = spop %120 }
  0xce   :  { %s89_s23 = sadd.f32 %s121_s2, %s119_s1 }
  0xd0   :  { %s97_s27 = smul.f32 0.125, %s89_s23 }
  0xd2   :  { %98 = sst [smem:[#allocation7]] %s97_s27 }
  0xd3   :  { %107 = dma.smem_to_hbm %s194_s28, 16, %s105_s26, [#allocation4]  }
  0xd4   :  { %190 = dma.done.wait [#allocation4], 16  }
  0xd5   :  { %191 = vsyncadd [#allocation4], 4294967280 }
  0xd6   :  { %112 = sfence }
  0xd7   :  { %113 = vsyncpa [#allocation3], 1 }
  0xd8   :  { %114 = vsyncpa [#allocation6], 1 }
  0xd9   :  { %115 = vsyncpa [#allocation4], 1 }

</bundles_post_ra>
